<compile_context>
chip_gen: v7x
topology: tpu7x:2x2x1
jax: 0.10.0
libtpu: 0.0.40
codegen_flags: <defaults>
</compile_context>

<pallas_src>
import functools

import jax
import jax.numpy as jnp
from jax import lax
from jax.experimental import pallas as pl
from jax.experimental.pallas import tpu as pltpu


def _round_up(x, m):
    return -(-x // m) * m


def _self_output_kernel(x_ref, res_ref, w_ref, b_ref, g_ref, beta_ref, o_ref,
                        *, eps, inv_h, mxu_dtype):
    # x_ref/res_ref: (tm, H) tiles, w_ref: (H, H), b/g/beta: (1, H), o_ref: (tm, H)
    x = x_ref[...]
    w = w_ref[...]
    if mxu_dtype is not None:
        x = x.astype(mxu_dtype)
        w = w.astype(mxu_dtype)

    # Dense: MXU matmul, f32 accumulation.
    z = jnp.dot(x, w, preferred_element_type=jnp.float32)

    # Bias + residual (dropout is identity at inference).
    # TODO(synk): training-mode dropout would need pltpu.prng_seed/prng_random_bits.
    z = z + b_ref[...].astype(jnp.float32) + res_ref[...].astype(jnp.float32)

    # LayerNorm over the hidden dim, single-pass moments.
    inv_h_f = jnp.float32(inv_h)
    s1 = jnp.sum(z, axis=-1, keepdims=True)
    s2 = jnp.sum(z * z, axis=-1, keepdims=True)
    mean = s1 * inv_h_f
    var = jnp.maximum(s2 * inv_h_f - mean * mean, jnp.float32(0.0))
    inv = lax.rsqrt(var + jnp.float32(eps))
    y = (z - mean) * inv * g_ref[...].astype(jnp.float32) \
        + beta_ref[...].astype(jnp.float32)

    o_ref[...] = y.astype(o_ref.dtype)


def _choose_tm(M, tm_max, min_steps=4, tm_min=512):
    """Pick a row tile: big enough to amortize per-step overhead, small enough
    to keep >= min_steps grid steps (v7x 2-TC sharding) when M is large."""
    tm = min(tm_max, _round_up(M, 8))
    tm = max(8, _round_up(tm, 8))
    while tm > tm_min and pl.cdiv(M, tm) < min_steps:
        tm = max(tm_min, _round_up(tm // 2, 8))
    return tm


def splicebert_self_output(
    hidden_states,   # [M, H]
    input_tensor,    # [M, H]  (residual)
    weight_t,        # [H, H]  dense weight pre-transposed: z = x @ weight_t
    bias,            # [H]
    gamma,           # [H]
    beta,            # [H]
    *,
    eps=1e-12,
    tm=1024,
    mxu_dtype=jnp.bfloat16,   # MXU operand dtype; None => exact f32 matmul
):
    M, H = hidden_states.shape
    assert input_tensor.shape == (M, H)
    assert weight_t.shape == (H, H)

    tm_eff = _choose_tm(M, tm)
    grid = (pl.cdiv(M, tm_eff),)   # partial tail block handled by Pallas masking

    if mxu_dtype is not None and weight_t.dtype != mxu_dtype:
        # Ship the resident weight in the MXU input dtype (halves its HBM bytes).
        weight_t = weight_t.astype(mxu_dtype)

    b2d = bias.reshape(1, H)
    g2d = gamma.reshape(1, H)
    beta2d = beta.reshape(1, H)

    x_bytes = hidden_states.dtype.itemsize
    r_bytes = input_tensor.dtype.itemsize
    o_bytes = hidden_states.dtype.itemsize
    w_bytes = weight_t.dtype.itemsize

    # Explicit scoped-VMEM budget: double-buffered streamed tiles + resident
    # params + slack; clamp to [32 MiB, 64 MiB] (safe on v5e/v6e/v7x).
    vmem_est = (2 * tm_eff * H * (x_bytes + r_bytes + o_bytes)
                + 2 * H * H * w_bytes + 6 * H * 4 + (2 << 20))
    vmem_limit = int(min(max(vmem_est, 32 << 20), 64 << 20))

    cost = pl.CostEstimate(
        flops=2 * M * H * H + 8 * M * H,
        transcendentals=M,
        bytes_accessed=M * H * (x_bytes + r_bytes + o_bytes) + H * H * w_bytes + 3 * H * 4,
    )

    out = pl.pallas_call(
        functools.partial(_self_output_kernel, eps=eps, inv_h=1.0 / H,
                          mxu_dtype=mxu_dtype),
        out_shape=jax.ShapeDtypeStruct((M, H), hidden_states.dtype),
        grid_spec=pltpu.PrefetchScalarGridSpec(
            num_scalar_prefetch=0,
            grid=grid,
            in_specs=[
                pl.BlockSpec((tm_eff, H), lambda i: (i, 0)),  # x tile (streamed)
                pl.BlockSpec((tm_eff, H), lambda i: (i, 0)),  # residual tile
                pl.BlockSpec((H, H), lambda i: (0, 0)),        # weight (resident)
                pl.BlockSpec((1, H), lambda i: (0, 0)),        # bias (resident)
                pl.BlockSpec((1, H), lambda i: (0, 0)),        # gamma (resident)
                pl.BlockSpec((1, H), lambda i: (0, 0)),        # beta (resident)
            ],
            out_specs=pl.BlockSpec((tm_eff, H), lambda i: (i, 0)),
        ),
        compiler_params=pltpu.CompilerParams(
            dimension_semantics=("parallel",),
            vmem_limit_bytes=vmem_limit,
        ),
        cost_estimate=cost,
    )(hidden_states, input_tensor, weight_t, b2d, g2d, beta2d)
    return out


def reference(hidden_states, input_tensor, weight_t, bias, gamma, beta, eps=1e-12):
    x = hidden_states.astype(jnp.float32)
    z = x @ weight_t.astype(jnp.float32) + bias.astype(jnp.float32)
    z = z + input_tensor.astype(jnp.float32)
    mean = jnp.mean(z, axis=-1, keepdims=True)
    var = jnp.mean((z - mean) ** 2, axis=-1, keepdims=True)
    y = (z - mean) / jnp.sqrt(var + eps)
    y = y * gamma.astype(jnp.float32) + beta.astype(jnp.float32)
    return y.astype(hidden_states.dtype)


if __name__ == "__main__":
    # Small config consistent with the module: hidden_size=32, layer_norm_eps=1e-12
    batch, seq, hidden = 2, 8, 32
    eps = 1e-12

    key = jax.random.PRNGKey(0)
    kx, kr, kw, kb, kg, kbe = jax.random.split(key, 6)

    hidden_states = jax.random.normal(kx, (batch, seq, hidden), dtype=jnp.float32)
    input_tensor = jax.random.normal(kr, (batch, seq, hidden), dtype=jnp.float32)

    # nn.Linear stores weight as [out, in]; kernel consumes the transpose.
    w = jax.random.normal(kw, (hidden, hidden), dtype=jnp.float32) * (
        1.0 / jnp.sqrt(hidden)
    )
    b = jax.random.normal(kb, (hidden,), dtype=jnp.float32) * 0.02
    gamma = 1.0 + jax.random.normal(kg, (hidden,), dtype=jnp.float32) * 0.01
    beta = jax.random.normal(kbe, (hidden,), dtype=jnp.float32) * 0.01

    x2d = hidden_states.reshape(batch * seq, hidden)
    r2d = input_tensor.reshape(batch * seq, hidden)
    w_t = w.T  # [H, H] so z = x @ w_t

    ref2d = reference(x2d, r2d, w_t, b, gamma, beta, eps=eps)

    # 1) Exact f32-MXU path: strict check against the f32 reference.
    out_f32 = splicebert_self_output(
        x2d, r2d, w_t, b, gamma, beta, eps=eps, mxu_dtype=None
    )
    jax.block_until_ready(out_f32)
    assert out_f32.shape == (batch * seq, hidden)
    assert jnp.allclose(out_f32, ref2d, atol=1e-5, rtol=1e-5), "f32 path mismatch"

    # 2) Default performance path: bf16 MXU operands, f32 accumulation/epilogue.
    out_bf = splicebert_self_output(x2d, r2d, w_t, b, gamma, beta, eps=eps)
    jax.block_until_ready(out_bf)
    assert jnp.allclose(out_bf, ref2d, atol=3e-2, rtol=3e-2), "bf16 path mismatch"

    # 3) Ragged row count (M not a multiple of 8 / tile): exercises the
    #    partial-tail masking path with no host-side pad/slice.
    M2 = 26
    x3 = jax.random.normal(kx, (M2, hidden), dtype=jnp.float32)
    r3 = jax.random.normal(kr, (M2, hidden), dtype=jnp.float32)
    out3 = splicebert_self_output(x3, r3, w_t, b, gamma, beta, eps=eps, mxu_dtype=None)
    jax.block_until_ready(out3)
    ref3 = reference(x3, r3, w_t, b, gamma, beta, eps=eps)
    assert jnp.allclose(out3, ref3, atol=1e-5, rtol=1e-5), "ragged path mismatch"

    print("KERNEL_OK")
</pallas_src>

<mosaic_0001>
module attributes {stable_mosaic.version = 11 : i64} {
  func.func @_self_output_kernel(%arg0: i32, %arg1: memref<16x32xf32, #tpu.memory_space<vmem>>, %arg2: memref<16x32xf32, #tpu.memory_space<vmem>>, %arg3: memref<32x32xf32, #tpu.memory_space<vmem>>, %arg4: memref<1x32xf32, #tpu.memory_space<vmem>>, %arg5: memref<1x32xf32, #tpu.memory_space<vmem>>, %arg6: memref<1x32xf32, #tpu.memory_space<vmem>>, %arg7: memref<16x32xf32, #tpu.memory_space<vmem>>) attributes {dimension_semantics = [#tpu.dimension_semantics<parallel>], iteration_bounds = array<i64: 1>, scalar_prefetch = 0 : i64, scratch_operands = 0 : i64, tpu.core_type = #tpu.core_type<tc>, window_params = [{transform_indices = @transform_0, window_bounds = array<i64: 16, 32>}, {transform_indices = @transform_1, window_bounds = array<i64: 16, 32>}, {pipeline_mode = #tpu.pipeline_mode<synchronous>, transform_indices = @transform_2, window_bounds = array<i64: 32, 32>}, {pipeline_mode = #tpu.pipeline_mode<synchronous>, transform_indices = @transform_3, window_bounds = array<i64: 1, 32>}, {pipeline_mode = #tpu.pipeline_mode<synchronous>, transform_indices = @transform_4, window_bounds = array<i64: 1, 32>}, {pipeline_mode = #tpu.pipeline_mode<synchronous>, transform_indices = @transform_5, window_bounds = array<i64: 1, 32>}, {transform_indices = @transform_6, window_bounds = array<i64: 16, 32>}]} {
    %c0 = arith.constant 0 : index
    %c0_0 = arith.constant 0 : index
    %0 = vector.load %arg1[%c0, %c0_0] : memref<16x32xf32, #tpu.memory_space<vmem>>, vector<16x32xf32>
    %c0_1 = arith.constant 0 : index
    %c0_2 = arith.constant 0 : index
    %1 = vector.load %arg3[%c0_1, %c0_2] : memref<32x32xf32, #tpu.memory_space<vmem>>, vector<32x32xf32>
    %cst = arith.constant dense<0.000000e+00> : vector<16x32xf32>
    %2 = tpu.matmul %0, %1, %cst {dimension_numbers = #tpu.dot_dimension_numbers<[1], [0], [0], [1], [0, 0, 1, 1], [], []>} : vector<16x32xf32>, vector<32x32xf32>, vector<16x32xf32> -> vector<16x32xf32>
    %c0_3 = arith.constant 0 : index
    %c0_4 = arith.constant 0 : index
    %3 = vector.load %arg4[%c0_3, %c0_4] : memref<1x32xf32, #tpu.memory_space<vmem>>, vector<1x32xf32>
    %4 = vector.broadcast %3 : vector<1x32xf32> to vector<16x32xf32>
    %5 = arith.addf %2, %4 : vector<16x32xf32>
    %c0_5 = arith.constant 0 : index
    %c0_6 = arith.constant 0 : index
    %6 = vector.load %arg2[%c0_5, %c0_6] : memref<16x32xf32, #tpu.memory_space<vmem>>, vector<16x32xf32>
    %7 = arith.addf %5, %6 : vector<16x32xf32>
    %cst_7 = arith.constant dense<0.000000e+00> : vector<16xf32>
    %8 = vector.multi_reduction <add>, %7, %cst_7 [1] : vector<16x32xf32> to vector<16xf32>
    %9 = vector.shape_cast %8 : vector<16xf32> to vector<16x1xf32>
    %10 = arith.mulf %7, %7 : vector<16x32xf32>
    %cst_8 = arith.constant dense<0.000000e+00> : vector<16xf32>
    %11 = vector.multi_reduction <add>, %10, %cst_8 [1] : vector<16x32xf32> to vector<16xf32>
    %12 = vector.shape_cast %11 : vector<16xf32> to vector<16x1xf32>
    %cst_9 = arith.constant 3.125000e-02 : f32
    %13 = vector.broadcast %cst_9 : f32 to vector<16x1xf32>
    %14 = arith.mulf %9, %13 : vector<16x1xf32>
    %cst_10 = arith.constant 3.125000e-02 : f32
    %15 = vector.broadcast %cst_10 : f32 to vector<16x1xf32>
    %16 = arith.mulf %12, %15 : vector<16x1xf32>
    %17 = arith.mulf %14, %14 : vector<16x1xf32>
    %18 = arith.subf %16, %17 : vector<16x1xf32>
    %cst_11 = arith.constant 0.000000e+00 : f32
    %19 = vector.broadcast %cst_11 : f32 to vector<16x1xf32>
    %20 = arith.maximumf %18, %19 : vector<16x1xf32>
    %cst_12 = arith.constant 9.99999996E-13 : f32
    %21 = vector.broadcast %cst_12 : f32 to vector<16x1xf32>
    %22 = arith.addf %20, %21 : vector<16x1xf32>
    %23 = math.rsqrt %22 : vector<16x1xf32>
    %24 = vector.broadcast %14 : vector<16x1xf32> to vector<16x32xf32>
    %25 = arith.subf %7, %24 : vector<16x32xf32>
    %26 = vector.broadcast %23 : vector<16x1xf32> to vector<16x32xf32>
    %27 = arith.mulf %25, %26 : vector<16x32xf32>
    %c0_13 = arith.constant 0 : index
    %c0_14 = arith.constant 0 : index
    %28 = vector.load %arg5[%c0_13, %c0_14] : memref<1x32xf32, #tpu.memory_space<vmem>>, vector<1x32xf32>
    %29 = vector.broadcast %28 : vector<1x32xf32> to vector<16x32xf32>
    %30 = arith.mulf %27, %29 : vector<16x32xf32>
    %c0_15 = arith.constant 0 : index
    %c0_16 = arith.constant 0 : index
    %31 = vector.load %arg6[%c0_15, %c0_16] : memref<1x32xf32, #tpu.memory_space<vmem>>, vector<1x32xf32>
    %32 = vector.broadcast %31 : vector<1x32xf32> to vector<16x32xf32>
    %33 = arith.addf %30, %32 : vector<16x32xf32>
    %c0_17 = arith.constant 0 : index
    %c0_18 = arith.constant 0 : index
    %34 = vector.load %arg7[%c0_17, %c0_18] : memref<16x32xf32, #tpu.memory_space<vmem>>, vector<16x32xf32>
    tpu.vector_store %arg7[%c0_17, %c0_18], %33 {strides = array<i32>} : memref<16x32xf32, #tpu.memory_space<vmem>>, vector<16x32xf32>,
    return
  }
  func.func @transform_0(%arg0: i32) -> (i32, i32) {
    %c0_i32 = arith.constant 0 : i32
    %c0_i32_0 = arith.constant 0 : i32
    return %arg0, %c0_i32 : i32, i32
  }
  func.func @transform_1(%arg0: i32) -> (i32, i32) {
    %c0_i32 = arith.constant 0 : i32
    %c0_i32_0 = arith.constant 0 : i32
    return %arg0, %c0_i32 : i32, i32
  }
  func.func @transform_2(%arg0: i32) -> (i32, i32) {
    %c0_i32 = arith.constant 0 : i32
    %c0_i32_0 = arith.constant 0 : i32
    %c0_i32_1 = arith.constant 0 : i32
    return %c0_i32, %c0_i32_0 : i32, i32
  }
  func.func @transform_3(%arg0: i32) -> (i32, i32) {
    %c0_i32 = arith.constant 0 : i32
    %c0_i32_0 = arith.constant 0 : i32
    %c0_i32_1 = arith.constant 0 : i32
    return %c0_i32, %c0_i32_0 : i32, i32
  }
  func.func @transform_4(%arg0: i32) -> (i32, i32) {
    %c0_i32 = arith.constant 0 : i32
    %c0_i32_0 = arith.constant 0 : i32
    %c0_i32_1 = arith.constant 0 : i32
    return %c0_i32, %c0_i32_0 : i32, i32
  }
  func.func @transform_5(%arg0: i32) -> (i32, i32) {
    %c0_i32 = arith.constant 0 : i32
    %c0_i32_0 = arith.constant 0 : i32
    %c0_i32_1 = arith.constant 0 : i32
    return %c0_i32, %c0_i32_0 : i32, i32
  }
  func.func @transform_6(%arg0: i32) -> (i32, i32) {
    %c0_i32 = arith.constant 0 : i32
    %c0_i32_0 = arith.constant 0 : i32
    return %arg0, %c0_i32 : i32, i32
  }
}

</mosaic_0001>

<bundles_post_ra>
// kernel: tpu_custom_call.1
= control target key start
LH: loop header
LB: loop body
LE: loop exit
PB: predicated region body
PF: predicated region fallthrough
CT: control target
= control target key end

     0   :  { %11 = vsyncpa [#allocation3], 0  ;;  %s493_s0 = inlined_call_operand.hbm [shape: f32[16,32], index: 0, kind: input, shape index: {}]   ;;  %s494_s1 = inlined_call_operand.hbm [shape: f32[16,32], index: 1, kind: input, shape index: {}]   ;;  %s495_s2 = inlined_call_operand.hbm [shape: f32[32,32], index: 2, kind: input, shape index: {}]   ;;  %s496_s3 = inlined_call_operand.vmem [shape: f32[1,32], index: 3, kind: input, shape index: {}]   ;;  %s497_s4 = inlined_call_operand.vmem [shape: f32[1,32], index: 4, kind: input, shape index: {}]   ;;  %s498_s5 = inlined_call_operand.vmem [shape: f32[1,32], index: 5, kind: input, shape index: {}]   ;;  %s499_s6 = inlined_call_operand.hbm [shape: f32[16,32], index: 6, kind: output, shape index: {}]  }
   0x1   :  { %12 = vsyncpa [#allocation6], 0 }
   0x2   :  { %13 = vsyncpa [#allocation4], 0  ;;  %s368_s21 = smov [#allocation5]   ;;  %s369_s23 = smov [#allocation2]  }
   0x3   :  { %s31_s22 = sshll.u32 %s368_s21, 4  ;;  %s19_s24 = sshll.u32 %s369_s23, 4  ;;  %s32_s22 = int_to_ptr.vmem [resolvable:$true] %s31_s22  ;;  %s409_s24 = int_to_ptr.vmem [resolvable:$true] %s19_s24 }
   0x4   :  { %s274_s27 = scalar_lea.hbm %s494_s1, 256 }
   0x5   :  { %p275_p0 = scmp.ne.s32.totalorder %s494_s1, %s274_s27  ;;  %p278_p1 = scmp.lt.u32.totalorder %s274_s27, %s494_s1 }
   0x7   :  { %p280_p2 = pnand %p278_p1, %p275_p0 }
   0x9   :  { %283 = shalt.err (!%p280_p2)
}
   0xa   :  { %s284_s8 = scalar_lea.vmem %s32_s22, 256  ;;  %p289_p4 = scmp.lt.s32.totalorder %s32_s22, %s32_s22 }
   0xb   :  { %p285_p3 = scmp.ne.s32.totalorder %s32_s22, %s284_s8  ;;  %p290_p5 = scmp.lt.s32.totalorder %s284_s8, %s284_s8 }
   0xd   :  { %p291_p6 = por %p290_p5, %p289_p4 }
   0xf   :  { %p292_p7 = pnand %p291_p6, %p285_p3 }
  0x11   :  { %295 = shalt.err (!%p292_p7)
}
  0x12   :  { %s370_s9 = smov 128   ;;  %s371_s10 = smov 8  }
  0x13   :  { %37 = dma.hbm_to_vmem [thread:$0]  %s494_s1, 256, %s32_s22, [#allocation6], %s370_s9, %s370_s9, %s371_s10  }
  0x14   :  { %s296_s15 = scalar_lea.hbm %s493_s0, 256 }
  0x15   :  { %p297_p8 = scmp.ne.s32.totalorder %s493_s0, %s296_s15  ;;  %p300_p9 = scmp.lt.u32.totalorder %s296_s15, %s493_s0 }
  0x17   :  { %p302_p10 = pnand %p300_p9, %p297_p8 }
  0x19   :  { %305 = shalt.err (!%p302_p10)
}
  0x1a   :  { %s306_s20 = scalar_lea.vmem %s409_s24, 256  ;;  %p311_p12 = scmp.lt.s32.totalorder %s409_s24, %s409_s24 }
  0x1b   :  { %p307_p11 = scmp.ne.s32.totalorder %s409_s24, %s306_s20  ;;  %p312_p13 = scmp.lt.s32.totalorder %s306_s20, %s306_s20 }
  0x1d   :  { %p313_p0 = por %p312_p13, %p311_p12 }
  0x1f   :  { %p314_p1 = pnand %p313_p0, %p307_p11 }
  0x21   :  { %317 = shalt.err (!%p314_p1)
}
  0x22   :  { %25 = dma.hbm_to_vmem [thread:$0]  %s493_s0, 256, %s409_s24, [#allocation3], %s370_s9, %s370_s9, %s371_s10  }
  0x23   :  { %s372_s22 = smov [#allocation7]   ;;  %s318_s27 = scalar_lea.hbm %s495_s2, 512 }
  0x24   :  { %s43_s23 = sshll.u32 %s372_s22, 4  ;;  %p319_p2 = scmp.ne.s32.totalorder %s495_s2, %s318_s27  ;;  %s44_s23 = int_to_ptr.vmem [resolvable:$true] %s43_s23 }
  0x25   :  { %p322_p3 = scmp.lt.u32.totalorder %s318_s27, %s495_s2 }
  0x27   :  { %p324_p4 = pnand %p322_p3, %p319_p2 }
  0x29   :  { %327 = shalt.err (!%p324_p4)
}
  0x2a   :  { %s328_s8 = scalar_lea.vmem %s44_s23, 512  ;;  %p333_p6 = scmp.lt.s32.totalorder %s44_s23, %s44_s23 }
  0x2b   :  { %p329_p5 = scmp.ne.s32.totalorder %s44_s23, %s328_s8  ;;  %p334_p7 = scmp.lt.s32.totalorder %s328_s8, %s328_s8 }
  0x2d   :  { %p335_p8 = por %p334_p7, %p333_p6 }
  0x2f   :  { %p336_p9 = pnand %p335_p8, %p329_p5 }
  0x31   :  { %339 = shalt.err (!%p336_p9)
}
  0x32   :  { %49 = dma.hbm_to_vmem [thread:$0]  %s495_s2, 512, %s44_s23, [#allocation6], %s370_s9, %s370_s9, %s371_s10  }
  0x33   :  { %362 = dma.done.wait [#allocation3], 256  }
  0x34   :  { %363 = vsyncadd [#allocation3], 4294967040 }
  0x35   :  { %364 = dma.done.wait [#allocation6], 768  }
  0x36   :  { %365 = vsyncadd [#allocation6], 4294966528  ;;  %vm78_vm0 = vcmask 261120   ;;  %v67_v0 = vld [vmem:[#allocation7] sm:$0xff]  ;;  %v68_v1 = vld [vmem:[#allocation7 + $0x8] sm:$0xff]  ;;  %s373_s15 = smov [#allocation8]  }
  0x37   :  { %v69_v2 = vld [vmem:[#allocation7 + $0x10] sm:$0xff]  ;;  %v256_v3 = vpack.c.bf16 %v68_v1, %v67_v0  ;;  %v70_v4 = vld [vmem:[#allocation7 + $0x18] sm:$0xff]  ;;  %v65_v5 = vld [vmem:[#allocation2] sm:$0xff]  ;;  %s221_s16 = sshll.u32 %s373_s15, 4  ;;  %s222_s16 = int_to_ptr.vmem [resolvable:$true] %s221_s16 }
  0x38   :  { %v260_v6 = vpack.c.bf16 %v70_v4, %v69_v2  ;;  %253 = vmatprep.mubr.msk.f32.mxu0 %vm78_vm0, %v65_v5  ;;  %v66_v7 = vld [vmem:[#allocation2 + $0x8] sm:$0xff]  ;;  %v234_v8 = vld [vmem:[%s496_s3] ss:$0 sm:$0xff]  ;;  %v161_v11 = vld [vmem:[#allocation5 + $0x8] sm:$0xff]  ;;  %p345_p11 = scmp.lt.s32.totalorder %s222_s16, %s222_s16 }
  0x39   :  { %257 = vmatprep.subr.bf16.mxu0 %v256_v3  ;;  %v160_v13 = vld [vmem:[#allocation5] sm:$0xff]  ;;  %v237_v41 = vld [vmem:[%s497_s4] ss:$0 sm:$0xff]  ;;  %s340_s4 = scalar_lea.vmem %s222_s16, 256 }
  0x3a   :  { %259 = vmatpush3.bf16.msra.mxu0 %v256_v3  ;;  %v238_v43 = vld [vmem:[%s498_s5] ss:$0 sm:$0xff]  ;;  %p341_p10 = scmp.ne.s32.totalorder %s222_s16, %s340_s4  ;;  %p346_p12 = scmp.lt.s32.totalorder %s340_s4, %s340_s4 }
  0x3b   :  { %261 = vmatprep.subr.bf16.mxu0 %v260_v6 }
  0x3c   :  { %p347_p13 = por %p346_p12, %p345_p11 }
  0x3e   :  { %263 = vmatpush3.bf16.msra.mxu0 %v260_v6  ;;  %p348_p0 = pnand %p347_p13, %p341_p10 }
  0x41   :  { %254 = vmatmul.mubr.msk.f32.vlgmr.msra.gmra.mrb[0].mxu0 %vm78_vm0, %v66_v7 }
 0x114   :  { %v255_v9 = vpop.f32.mrb[0].mxu0 }
 0x115   :  { %v157_v10 = vadd.f32 %v255_v9, %v234_v8  ;;  %v151_v12 = vpop.f32.mrb[1].mxu0 }
 0x116   :  { %v152_v14 = vadd.f32 %v234_v8, %v151_v12 }
 0x117   :  { %v163_v15 = vadd.f32 %v161_v11, %v157_v10 }
 0x118   :  { %v162_v16 = vadd.f32 %v160_v13, %v152_v14 }
 0x119   :  { %v171_v20 = vmul.f32 %v163_v15, %v163_v15  ;;  %v167_v21 = vsel %vm78_vm0, %v163_v15, 0.0 }
 0x11a   :  { %v164_v17 = vsel %vm78_vm0, %v162_v16, 0.0  ;;  %v170_v18 = vmul.f32 %v162_v16, %v162_v16 }
 0x11b   :  { %165 = vadd.xlane.f32.xlu0 %v164_v17  ;;  %v175_v22 = vsel %vm78_vm0, %v171_v20, 0.0 }
 0x11c   :  { %v172_v19 = vsel %vm78_vm0, %v170_v18, 0.0 }
 0x11d   :  { %173 = vadd.xlane.f32.xlu1 %v172_v19 }
 0x11f   :  { %168 = vadd.xlane.f32.xlu0 %v167_v21 }
 0x121   :  { %176 = vadd.xlane.f32.xlu1 %v175_v22 }
 0x1a8   :  { %v166_v23 = vpop.xlane.xlu0 %165 }
 0x1a9   :  { %v178_v24 = vmul.f32 0.03125, %v166_v23 }
 0x1aa   :  { %v174_v25 = vpop.xlane.xlu1 %173 }
 0x1ab   :  { %v182_v26 = vmul.f32 %v178_v24, %v178_v24  ;;  %v180_v27 = vmul.f32 0.03125, %v174_v25  ;;  %v192_v39 = vsub.f32 %v162_v16, %v178_v24 }
 0x1ac   :  { %v169_v28 = vpop.xlane.xlu0 %168 }
 0x1ad   :  { %v184_v29 = vsub.f32 %v180_v27, %v182_v26  ;;  %v179_v30 = vmul.f32 0.03125, %v169_v28 }
 0x1ae   :  { %v177_v31 = vpop.xlane.xlu1 %176 }
 0x1af   :  { %v186_v32 = vmax.f32 %v184_v29, 0.0  ;;  %v183_v33 = vmul.f32 %v179_v30, %v179_v30  ;;  %v181_v34 = vmul.f32 0.03125, %v177_v31  ;;  %v193_v44 = vsub.f32 %v163_v15, %v179_v30 }
 0x1b1   :  { %v188_v35 = vadd.f32 1e-12, %v186_v32  ;;  %v185_v36 = vsub.f32 %v181_v34, %v183_v33 }
 0x1b3   :  { %270 = vrsqrt.f32 %v188_v35  ;;  %v187_v37 = vmax.f32 %v185_v36, 0.0 }
 0x1b5   :  { %v189_v38 = vadd.f32 1e-12, %v187_v37 }
 0x1b7   :  { %272 = vrsqrt.f32 %v189_v38 }
 0x1bd   :  { %v271_v40 = vpop.eup %270 }
 0x1be   :  { %v194_v42 = vmul.f32 %v271_v40, %v192_v39 }
 0x1c0   :  { %v203_v45 = vmul.f32 %v237_v41, %v194_v42 }
 0x1c1   :  { %v273_v46 = vpop.eup %272 }
 0x1c2   :  { %v195_v47 = vmul.f32 %v273_v46, %v193_v44  ;;  %v212_v48 = vadd.f32 %v238_v43, %v203_v45 }
 0x1c4   :  { %v204_v49 = vmul.f32 %v237_v41, %v195_v47  ;;  %214 = vst.msk [vmem:[#allocation8] sm:$0xff] %vm78_vm0, %v212_v48 }
 0x1c6   :  { %v213_v50 = vadd.f32 %v238_v43, %v204_v49 }
 0x1c8   :  { %215 = vst.msk [vmem:[#allocation8 + $0x8] sm:$0xff] %vm78_vm0, %v213_v50 }
 0x1c9   :  { %351 = shalt.err (!%p348_p0)
}
 0x1ca   :  { %s352_s18 = scalar_lea.hbm %s499_s6, 256 }
 0x1cb   :  { %p353_p1 = scmp.ne.s32.totalorder %s499_s6, %s352_s18  ;;  %p356_p2 = scmp.lt.u32.totalorder %s352_s18, %s499_s6 }
 0x1cd   :  { %p358_p3 = pnand %p356_p2, %p353_p1 }
 0x1cf   :  { %361 = shalt.err (!%p358_p3)
}
 0x1d0   :  { %227 = dma.vmem_to_hbm [thread:$0]  %s222_s16, 256, %s499_s6, [#allocation4], %s370_s9, %s370_s9, %s371_s10  }
 0x1d1   :  { %366 = dma.done.wait [#allocation4], 256  }
 0x1d2   :  { %367 = vsyncadd [#allocation4], 4294967040 }
 0x1d3   :  { %231 = vsyncpa [#allocation3], 1 }
 0x1d4   :  { %232 = vsyncpa [#allocation6], 1 }
 0x1d5   :  { %233 = vsyncpa [#allocation4], 1 }

</bundles_post_ra>
